<compile_context>
chip_gen: v5e
topology: v5e:2x2
jax: 0.10.0
libtpu: 0.0.40
codegen_flags: <defaults>
</compile_context>

<pallas_src>
import functools

import jax
import jax.numpy as jnp
from jax.experimental import pallas as pl
from jax.experimental.pallas import tpu as pltpu

LANE = 128  # pad feature dims to this so output stores are lane-dense


def _round_up(x, m):
    return ((x + m - 1) // m) * m


def _pick_tile(n):
    """Largest tile in {512,256,128} that does not increase padded N."""
    best_t, best_pad = 128, _round_up(n, 128)
    for t in (256, 512):
        p = _round_up(n, t)
        if p <= best_pad:
            best_t, best_pad = t, p
    return best_t, best_pad


# --------------------------------------------------------------------------
# Kernel: one (i, k) grid step of   out = A_hat @ (X @ W) + b   [+ ReLU]
# --------------------------------------------------------------------------
def _gcn_layer_kernel(a_ref, x_ref, w_ref, b_ref, o_ref, acc_ref, *, apply_relu):
    # a_ref  : (TM, TK)        bf16   A_hat tile (rows i, cols k)
    # x_ref  : (TK, F_in)      bf16   X rows for contraction tile k
    # w_ref  : (F_in, F_out)   bf16   resident weight
    # b_ref  : (1, F_out)      f32    resident bias
    # o_ref  : (TM, F_out)            output tile, written at k == last
    # acc_ref: (TM, F_out)     f32    VMEM accumulator
    k = pl.program_id(1)

    @pl.when(k == 0)
    def _():
        acc_ref[...] = jnp.zeros_like(acc_ref)

    # Feature transform for this contraction tile (MXU, f32 accumulate).
    h = jnp.dot(x_ref[...], w_ref[...], preferred_element_type=jnp.float32)
    # Neighborhood aggregation (MXU, f32 accumulate).
    acc_ref[...] += jnp.dot(
        a_ref[...], h.astype(jnp.bfloat16), preferred_element_type=jnp.float32
    )

    @pl.when(k == pl.num_programs(1) - 1)
    def _():
        out = acc_ref[...] + b_ref[...]
        if apply_relu:
            out = jnp.maximum(out, 0.0)
        o_ref[...] = out.astype(o_ref.dtype)


def gcn_layer(a_hat, x, w, b2d, *, apply_relu, out_dtype, tile):
    """One GCNConv layer on padded, bf16 operands: A_hat @ (x @ w) + b."""
    n_pad = a_hat.shape[0]
    f_in = x.shape[1]
    f_out = w.shape[1]
    assert n_pad % tile == 0 and f_in % LANE == 0 and f_out % LANE == 0
    grid_i = n_pad // tile
    grid_k = n_pad // tile

    itemsize = lambda a: jnp.dtype(a.dtype).itemsize
    cost = pl.CostEstimate(
        flops=2 * n_pad * f_in * f_out * grid_i + 2 * n_pad * n_pad * f_out,
        transcendentals=0,
        bytes_accessed=(
            a_hat.size * itemsize(a_hat)
            + x.size * itemsize(x) * grid_i
            + w.size * itemsize(w)
            + b2d.size * itemsize(b2d)
            + n_pad * f_out * jnp.dtype(out_dtype).itemsize
        ),
    )

    kernel = functools.partial(_gcn_layer_kernel, apply_relu=apply_relu)
    return pl.pallas_call(
        kernel,
        out_shape=jax.ShapeDtypeStruct((n_pad, f_out), out_dtype),
        grid_spec=pltpu.PrefetchScalarGridSpec(
            num_scalar_prefetch=0,
            grid=(grid_i, grid_k),
            in_specs=[
                pl.BlockSpec((tile, tile), lambda i, k: (i, k)),    # A_hat tile
                pl.BlockSpec((tile, f_in), lambda i, k: (k, 0)),    # X rows (tile k)
                pl.BlockSpec((f_in, f_out), lambda i, k: (0, 0)),   # W resident
                pl.BlockSpec((1, f_out), lambda i, k: (0, 0)),      # bias resident
            ],
            out_specs=pl.BlockSpec((tile, f_out), lambda i, k: (i, 0)),
            scratch_shapes=[pltpu.VMEM((tile, f_out), jnp.float32)],
        ),
        compiler_params=pltpu.CompilerParams(
            dimension_semantics=("parallel", "arbitrary"),
        ),
        cost_estimate=cost,
    )(a_hat, x, w, b2d)


# --------------------------------------------------------------------------
# Graph preprocessing (plain-JAX glue, hoisted out of the hot forward path)
# --------------------------------------------------------------------------
def build_normalized_adjacency(edge_index, num_nodes):
    """Dense A_hat = D^{-1/2} (A + I) D^{-1/2}, matching PyG GCNConv defaults."""
    src = edge_index[0]
    dst = edge_index[1]
    a = jnp.zeros((num_nodes, num_nodes), dtype=jnp.float32)
    a = a.at[dst, src].add(1.0)                 # message flows src -> dst
    a = a + jnp.eye(num_nodes, dtype=jnp.float32)
    deg = jnp.sum(a, axis=1)
    d_inv_sqrt = jnp.where(deg > 0, 1.0 / jnp.sqrt(deg), 0.0)
    return d_inv_sqrt[:, None] * a * d_inv_sqrt[None, :]


def prepare_graph(x, edge_index):
    """Pad + cast graph operands once (cache across forward calls)."""
    n, f_in = x.shape
    tile, n_pad = _pick_tile(n)
    f_in_pad = _round_up(f_in, LANE)

    a_hat = build_normalized_adjacency(edge_index, n)
    a_pad = jnp.zeros((n_pad, n_pad), jnp.bfloat16)
    a_pad = a_pad.at[:n, :n].set(a_hat.astype(jnp.bfloat16))

    x_pad = jnp.zeros((n_pad, f_in_pad), jnp.bfloat16)
    x_pad = x_pad.at[:n, :f_in].set(x.astype(jnp.bfloat16))
    return a_pad, x_pad, tile


# --------------------------------------------------------------------------
# Parameters
# --------------------------------------------------------------------------
def init_params(key, in_channels, out_channels):
    """Glorot-style init matching GCNConv weight/bias shapes (unpadded, f32)."""
    k1, k2 = jax.random.split(key)
    hidden = 2 * out_channels

    def glorot(k, shape):
        fan_in, fan_out = shape
        limit = jnp.sqrt(6.0 / (fan_in + fan_out))
        return jax.random.uniform(k, shape, jnp.float32, -limit, limit)

    return {
        "w1": glorot(k1, (in_channels, hidden)),
        "b1": jnp.zeros((hidden,), jnp.float32),
        "w2": glorot(k2, (hidden, out_channels)),
        "b2": jnp.zeros((out_channels,), jnp.float32),
    }


def pad_params(params, in_channels, out_channels):
    """Zero-pad feature dims to 128 lanes; weights bf16, biases f32 (1, F)."""
    hidden = 2 * out_channels
    f_in_p = _round_up(in_channels, LANE)
    h_p = _round_up(hidden, LANE)
    f_out_p = _round_up(out_channels, LANE)

    w1 = jnp.zeros((f_in_p, h_p), jnp.bfloat16)
    w1 = w1.at[:in_channels, :hidden].set(params["w1"].astype(jnp.bfloat16))
    b1 = jnp.zeros((1, h_p), jnp.float32).at[0, :hidden].set(params["b1"])

    w2 = jnp.zeros((h_p, f_out_p), jnp.bfloat16)
    w2 = w2.at[:hidden, :out_channels].set(params["w2"].astype(jnp.bfloat16))
    b2 = jnp.zeros((1, f_out_p), jnp.float32).at[0, :out_channels].set(params["b2"])
    return {"w1": w1, "b1": b1, "w2": w2, "b2": b2}


# --------------------------------------------------------------------------
# Forward pass (Encoder.forward): relu(conv1(x)) -> conv2
# --------------------------------------------------------------------------
@functools.partial(jax.jit, static_argnames=("num_nodes", "out_channels", "tile"))
def encoder_forward(x_pad, a_pad, params, *, num_nodes, out_channels, tile):
    h = gcn_layer(a_pad, x_pad, params["w1"], params["b1"],
                  apply_relu=True, out_dtype=jnp.bfloat16, tile=tile)
    z = gcn_layer(a_pad, h, params["w2"], params["b2"],
                  apply_relu=False, out_dtype=jnp.float32, tile=tile)
    return z[:num_nodes, :out_channels]


def encoder_reference(x, edge_index, params):
    """Pure-JAX f32 reference for correctness checking."""
    a_hat = build_normalized_adjacency(edge_index, x.shape[0])
    h = jnp.maximum(a_hat @ (x @ params["w1"]) + params["b1"], 0.0)
    return a_hat @ (h @ params["w2"]) + params["b2"]


if __name__ == "__main__":
    # Small deterministic problem: 300 nodes (pads to 384 -> 3x3 tile grid),
    # 16 input features, 8 latent dims (hidden = 16), ring graph.
    num_nodes = 300
    in_channels = 16
    out_channels = 8

    key = jax.random.PRNGKey(0)
    k_x, k_p = jax.random.split(key)
    x = jax.random.normal(k_x, (num_nodes, in_channels), dtype=jnp.float32)

    # Deterministic undirected ring graph (both directions listed).
    src = jnp.arange(num_nodes, dtype=jnp.int32)
    dst = (src + 1) % num_nodes
    edge_index = jnp.stack(
        [jnp.concatenate([src, dst]), jnp.concatenate([dst, src])], axis=0
    )  # [2, 2*num_nodes]

    params = init_params(k_p, in_channels, out_channels)
    params_pad = pad_params(params, in_channels, out_channels)

    # A_hat / X preprocessing is done once, outside the jitted hot path.
    a_pad, x_pad, tile = prepare_graph(x, edge_index)

    z = encoder_forward(
        x_pad, a_pad, params_pad,
        num_nodes=num_nodes, out_channels=out_channels, tile=tile,
    )
    jax.block_until_ready(z)
    assert z.shape == (num_nodes, out_channels)

    # Correctness vs. f32 reference (bf16 operands, f32 accumulation).
    z_ref = encoder_reference(x, edge_index, params)
    max_err = float(jnp.max(jnp.abs(z - z_ref)))
    assert max_err < 0.15, f"max abs error too large: {max_err}"

    print("KERNEL_OK")
</pallas_src>

<mosaic_0001>
module attributes {stable_mosaic.version = 11 : i64} {
  func.func @_gcn_layer_kernel(%arg0: i32, %arg1: i32, %arg2: memref<128x128xbf16, #tpu.memory_space<vmem>>, %arg3: memref<128x128xbf16, #tpu.memory_space<vmem>>, %arg4: memref<128x128xbf16, #tpu.memory_space<vmem>>, %arg5: memref<1x128xf32, #tpu.memory_space<vmem>>, %arg6: memref<128x128xf32, #tpu.memory_space<vmem>>, %arg7: memref<128x128xf32, #tpu.memory_space<vmem>>) attributes {dimension_semantics = [#tpu.dimension_semantics<parallel>, #tpu.dimension_semantics<arbitrary>], iteration_bounds = array<i64: 3, 3>, scalar_prefetch = 0 : i64, scratch_operands = 1 : i64, tpu.core_type = #tpu.core_type<tc>, window_params = [{transform_indices = @transform_0, window_bounds = array<i64: 128, 128>}, {transform_indices = @transform_1, window_bounds = array<i64: 128, 128>}, {pipeline_mode = #tpu.pipeline_mode<synchronous>, transform_indices = @transform_2, window_bounds = array<i64: 128, 128>}, {pipeline_mode = #tpu.pipeline_mode<synchronous>, transform_indices = @transform_3, window_bounds = array<i64: 1, 128>}, {transform_indices = @transform_4, window_bounds = array<i64: 128, 128>}]} {
    %c0_i32 = arith.constant 0 : i32
    %0 = arith.cmpi eq, %arg1, %c0_i32 : i32
    %1 = arith.extui %0 : i1 to i32
    %c0_i32_0 = arith.constant 0 : i32
    %2 = arith.cmpi ne, %1, %c0_i32_0 : i32
    scf.if %2 {
      %cst_12 = arith.constant 0.000000e+00 : f32
      %15 = vector.broadcast %cst_12 : f32 to vector<128x128xf32>
      %c0_13 = arith.constant 0 : index
      %c0_14 = arith.constant 0 : index
      %16 = vector.load %arg7[%c0_13, %c0_14] : memref<128x128xf32, #tpu.memory_space<vmem>>, vector<128x128xf32>
      tpu.vector_store %arg7[%c0_13, %c0_14], %15 {strides = array<i32>} : memref<128x128xf32, #tpu.memory_space<vmem>>, vector<128x128xf32>,
    } else {
    }
    %c0 = arith.constant 0 : index
    %c0_1 = arith.constant 0 : index
    %3 = vector.load %arg3[%c0, %c0_1] : memref<128x128xbf16, #tpu.memory_space<vmem>>, vector<128x128xbf16>
    %c0_2 = arith.constant 0 : index
    %c0_3 = arith.constant 0 : index
    %4 = vector.load %arg4[%c0_2, %c0_3] : memref<128x128xbf16, #tpu.memory_space<vmem>>, vector<128x128xbf16>
    %cst = arith.constant dense<0.000000e+00> : vector<128x128xf32>
    %5 = tpu.matmul %3, %4, %cst {dimension_numbers = #tpu.dot_dimension_numbers<[1], [0], [0], [1], [0, 0, 1, 1], [], []>} : vector<128x128xbf16>, vector<128x128xbf16>, vector<128x128xf32> -> vector<128x128xf32>
    %c0_4 = arith.constant 0 : index
    %c0_5 = arith.constant 0 : index
    %6 = vector.load %arg7[%c0_4, %c0_5] : memref<128x128xf32, #tpu.memory_space<vmem>>, vector<128x128xf32>
    %c0_6 = arith.constant 0 : index
    %c0_7 = arith.constant 0 : index
    %7 = vector.load %arg2[%c0_6, %c0_7] : memref<128x128xbf16, #tpu.memory_space<vmem>>, vector<128x128xbf16>
    %8 = arith.truncf %5 : vector<128x128xf32> to vector<128x128xbf16>
    %cst_8 = arith.constant dense<0.000000e+00> : vector<128x128xf32>
    %9 = tpu.matmul %7, %8, %cst_8 {dimension_numbers = #tpu.dot_dimension_numbers<[1], [0], [0], [1], [0, 0, 1, 1], [], []>} : vector<128x128xbf16>, vector<128x128xbf16>, vector<128x128xf32> -> vector<128x128xf32>
    %10 = arith.addf %6, %9 : vector<128x128xf32>
    %c0_9 = arith.constant 0 : index
    %c0_10 = arith.constant 0 : index
    %11 = vector.load %arg7[%c0_9, %c0_10] : memref<128x128xf32, #tpu.memory_space<vmem>>, vector<128x128xf32>
    tpu.vector_store %arg7[%c0_9, %c0_10], %10 {strides = array<i32>} : memref<128x128xf32, #tpu.memory_space<vmem>>, vector<128x128xf32>,
    %c2_i32 = arith.constant 2 : i32
    %12 = arith.cmpi eq, %arg1, %c2_i32 : i32
    %13 = arith.extui %12 : i1 to i32
    %c0_i32_11 = arith.constant 0 : i32
    %14 = arith.cmpi ne, %13, %c0_i32_11 : i32
    scf.if %14 {
      %c0_12 = arith.constant 0 : index
      %c0_13 = arith.constant 0 : index
      %15 = vector.load %arg7[%c0_12, %c0_13] : memref<128x128xf32, #tpu.memory_space<vmem>>, vector<128x128xf32>
      %c0_14 = arith.constant 0 : index
      %c0_15 = arith.constant 0 : index
      %16 = vector.load %arg5[%c0_14, %c0_15] : memref<1x128xf32, #tpu.memory_space<vmem>>, vector<1x128xf32>
      %17 = vector.broadcast %16 : vector<1x128xf32> to vector<128x128xf32>
      %18 = arith.addf %15, %17 : vector<128x128xf32>
      %c0_16 = arith.constant 0 : index
      %c0_17 = arith.constant 0 : index
      %19 = vector.load %arg6[%c0_16, %c0_17] : memref<128x128xf32, #tpu.memory_space<vmem>>, vector<128x128xf32>
      tpu.vector_store %arg6[%c0_16, %c0_17], %18 {strides = array<i32>} : memref<128x128xf32, #tpu.memory_space<vmem>>, vector<128x128xf32>,
    } else {
    }
    return
  }
  func.func @transform_0(%arg0: i32, %arg1: i32) -> (i32, i32) {
    %c0_i32 = arith.constant 0 : i32
    return %arg0, %arg1 : i32, i32
  }
  func.func @transform_1(%arg0: i32, %arg1: i32) -> (i32, i32) {
    %c0_i32 = arith.constant 0 : i32
    %c0_i32_0 = arith.constant 0 : i32
    return %arg1, %c0_i32 : i32, i32
  }
  func.func @transform_2(%arg0: i32, %arg1: i32) -> (i32, i32) {
    %c0_i32 = arith.constant 0 : i32
    %c0_i32_0 = arith.constant 0 : i32
    %c0_i32_1 = arith.constant 0 : i32
    return %c0_i32, %c0_i32_0 : i32, i32
  }
  func.func @transform_3(%arg0: i32, %arg1: i32) -> (i32, i32) {
    %c0_i32 = arith.constant 0 : i32
    %c0_i32_0 = arith.constant 0 : i32
    %c0_i32_1 = arith.constant 0 : i32
    return %c0_i32, %c0_i32_0 : i32, i32
  }
  func.func @transform_4(%arg0: i32, %arg1: i32) -> (i32, i32) {
    %c0_i32 = arith.constant 0 : i32
    %c0_i32_0 = arith.constant 0 : i32
    return %arg0, %c0_i32 : i32, i32
  }
}

module attributes {stable_mosaic.version = 11 : i64} {
  func.func @_gcn_layer_kernel(%arg0: i32, %arg1: i32, %arg2: memref<128x128xbf16, #tpu.memory_space<vmem>>, %arg3: memref<128x128xbf16, #tpu.memory_space<vmem>>, %arg4: memref<128x128xbf16, #tpu.memory_space<vmem>>, %arg5: memref<1x128xf32, #tpu.memory_space<vmem>>, %arg6: memref<128x128xbf16, #tpu.memory_space<vmem>>, %arg7: memref<128x128xf32, #tpu.memory_space<vmem>>) attributes {dimension_semantics = [#tpu.dimension_semantics<parallel>, #tpu.dimension_semantics<arbitrary>], iteration_bounds = array<i64: 3, 3>, scalar_prefetch = 0 : i64, scratch_operands = 1 : i64, tpu.core_type = #tpu.core_type<tc>, window_params = [{transform_indices = @transform_0, window_bounds = array<i64: 128, 128>}, {transform_indices = @transform_1, window_bounds = array<i64: 128, 128>}, {pipeline_mode = #tpu.pipeline_mode<synchronous>, transform_indices = @transform_2, window_bounds = array<i64: 128, 128>}, {pipeline_mode = #tpu.pipeline_mode<synchronous>, transform_indices = @transform_3, window_bounds = array<i64: 1, 128>}, {transform_indices = @transform_4, window_bounds = array<i64: 128, 128>}]} {
    %c0_i32 = arith.constant 0 : i32
    %0 = arith.cmpi eq, %arg1, %c0_i32 : i32
    %1 = arith.extui %0 : i1 to i32
    %c0_i32_0 = arith.constant 0 : i32
    %2 = arith.cmpi ne, %1, %c0_i32_0 : i32
    scf.if %2 {
      %cst_12 = arith.constant 0.000000e+00 : f32
      %15 = vector.broadcast %cst_12 : f32 to vector<128x128xf32>
      %c0_13 = arith.constant 0 : index
      %c0_14 = arith.constant 0 : index
      %16 = vector.load %arg7[%c0_13, %c0_14] : memref<128x128xf32, #tpu.memory_space<vmem>>, vector<128x128xf32>
      tpu.vector_store %arg7[%c0_13, %c0_14], %15 {strides = array<i32>} : memref<128x128xf32, #tpu.memory_space<vmem>>, vector<128x128xf32>,
    } else {
    }
    %c0 = arith.constant 0 : index
    %c0_1 = arith.constant 0 : index
    %3 = vector.load %arg3[%c0, %c0_1] : memref<128x128xbf16, #tpu.memory_space<vmem>>, vector<128x128xbf16>
    %c0_2 = arith.constant 0 : index
    %c0_3 = arith.constant 0 : index
    %4 = vector.load %arg4[%c0_2, %c0_3] : memref<128x128xbf16, #tpu.memory_space<vmem>>, vector<128x128xbf16>
    %cst = arith.constant dense<0.000000e+00> : vector<128x128xf32>
    %5 = tpu.matmul %3, %4, %cst {dimension_numbers = #tpu.dot_dimension_numbers<[1], [0], [0], [1], [0, 0, 1, 1], [], []>} : vector<128x128xbf16>, vector<128x128xbf16>, vector<128x128xf32> -> vector<128x128xf32>
    %c0_4 = arith.constant 0 : index
    %c0_5 = arith.constant 0 : index
    %6 = vector.load %arg7[%c0_4, %c0_5] : memref<128x128xf32, #tpu.memory_space<vmem>>, vector<128x128xf32>
    %c0_6 = arith.constant 0 : index
    %c0_7 = arith.constant 0 : index
    %7 = vector.load %arg2[%c0_6, %c0_7] : memref<128x128xbf16, #tpu.memory_space<vmem>>, vector<128x128xbf16>
    %8 = arith.truncf %5 : vector<128x128xf32> to vector<128x128xbf16>
    %cst_8 = arith.constant dense<0.000000e+00> : vector<128x128xf32>
    %9 = tpu.matmul %7, %8, %cst_8 {dimension_numbers = #tpu.dot_dimension_numbers<[1], [0], [0], [1], [0, 0, 1, 1], [], []>} : vector<128x128xbf16>, vector<128x128xbf16>, vector<128x128xf32> -> vector<128x128xf32>
    %10 = arith.addf %6, %9 : vector<128x128xf32>
    %c0_9 = arith.constant 0 : index
    %c0_10 = arith.constant 0 : index
    %11 = vector.load %arg7[%c0_9, %c0_10] : memref<128x128xf32, #tpu.memory_space<vmem>>, vector<128x128xf32>
    tpu.vector_store %arg7[%c0_9, %c0_10], %10 {strides = array<i32>} : memref<128x128xf32, #tpu.memory_space<vmem>>, vector<128x128xf32>,
    %c2_i32 = arith.constant 2 : i32
    %12 = arith.cmpi eq, %arg1, %c2_i32 : i32
    %13 = arith.extui %12 : i1 to i32
    %c0_i32_11 = arith.constant 0 : i32
    %14 = arith.cmpi ne, %13, %c0_i32_11 : i32
    scf.if %14 {
      %c0_12 = arith.constant 0 : index
      %c0_13 = arith.constant 0 : index
      %15 = vector.load %arg7[%c0_12, %c0_13] : memref<128x128xf32, #tpu.memory_space<vmem>>, vector<128x128xf32>
      %c0_14 = arith.constant 0 : index
      %c0_15 = arith.constant 0 : index
      %16 = vector.load %arg5[%c0_14, %c0_15] : memref<1x128xf32, #tpu.memory_space<vmem>>, vector<1x128xf32>
      %17 = vector.broadcast %16 : vector<1x128xf32> to vector<128x128xf32>
      %18 = arith.addf %15, %17 : vector<128x128xf32>
      %cst_16 = arith.constant 0.000000e+00 : f32
      %19 = vector.broadcast %cst_16 : f32 to vector<128x128xf32>
      %20 = arith.maximumf %18, %19 : vector<128x128xf32>
      %21 = arith.truncf %20 : vector<128x128xf32> to vector<128x128xbf16>
      %c0_17 = arith.constant 0 : index
      %c0_18 = arith.constant 0 : index
      %22 = vector.load %arg6[%c0_17, %c0_18] : memref<128x128xbf16, #tpu.memory_space<vmem>>, vector<128x128xbf16>
      tpu.vector_store %arg6[%c0_17, %c0_18], %21 {strides = array<i32>} : memref<128x128xbf16, #tpu.memory_space<vmem>>, vector<128x128xbf16>,
    } else {
    }
    return
  }
  func.func @transform_0(%arg0: i32, %arg1: i32) -> (i32, i32) {
    %c0_i32 = arith.constant 0 : i32
    return %arg0, %arg1 : i32, i32
  }
  func.func @transform_1(%arg0: i32, %arg1: i32) -> (i32, i32) {
    %c0_i32 = arith.constant 0 : i32
    %c0_i32_0 = arith.constant 0 : i32
    return %arg1, %c0_i32 : i32, i32
  }
  func.func @transform_2(%arg0: i32, %arg1: i32) -> (i32, i32) {
    %c0_i32 = arith.constant 0 : i32
    %c0_i32_0 = arith.constant 0 : i32
    %c0_i32_1 = arith.constant 0 : i32
    return %c0_i32, %c0_i32_0 : i32, i32
  }
  func.func @transform_3(%arg0: i32, %arg1: i32) -> (i32, i32) {
    %c0_i32 = arith.constant 0 : i32
    %c0_i32_0 = arith.constant 0 : i32
    %c0_i32_1 = arith.constant 0 : i32
    return %c0_i32, %c0_i32_0 : i32, i32
  }
  func.func @transform_4(%arg0: i32, %arg1: i32) -> (i32, i32) {
    %c0_i32 = arith.constant 0 : i32
    %c0_i32_0 = arith.constant 0 : i32
    return %arg0, %c0_i32 : i32, i32
  }
}

</mosaic_0001>

<bundles_post_ra>
// kernel: encoder_forward.3
= control target key start
LH: loop header
LB: loop body
LE: loop exit
PB: predicated region body
PF: predicated region fallthrough
CT: control target
= control target key end

     0   :  { %s1147_s15 = smov 0   ;;  %s1149_s16 = smov 0   ;;  %s1324_s0 = inlined_call_operand.vmem [shape: bf16[384,384], index: 0, kind: input, shape index: {}]   ;;  %s1325_s1 = inlined_call_operand.vmem [shape: bf16[384,128], index: 1, kind: input, shape index: {}]   ;;  %s1326_s2 = inlined_call_operand.vmem [shape: bf16[128,128], index: 2, kind: input, shape index: {}]   ;;  %s1327_s3 = inlined_call_operand.vmem [shape: f32[1,128], index: 3, kind: input, shape index: {}]   ;;  %s1328_s4 = inlined_call_operand.vmem [shape: f32[384,128], index: 4, kind: output, shape index: {}]  }
   0x1   :  { %s1151_s17 = smov 0   ;;  %s1153_s18 = smov 0  }
   0x2   :  { %s1155_s19 = smov 0   ;;  %s1157_s20 = smov 0  }
   0x3   :  { %s1159_s21 = smov 0  }
   0x4 LB: > { %s23_s22 = sadd.s32 1, %s1111_s19  ;;  %s26_s23 = sadd.s32 1, %s1115_s20  ;;  %s1119_s21 = sphi %s1159_s21, %s14_s21   ;;  %s1115_s20 = sphi %s1157_s20, %s1334_s20   ;;  %s1111_s19 = sphi %s1155_s19, %s1333_s19   ;;  %s1107_s18 = sphi %s1153_s18, %s1332_s18   ;;  %s1103_s17 = sphi %s1151_s17, %s1331_s17   ;;  %s1099_s16 = sphi %s1149_s16, %s1330_s16   ;;  %s1095_s15 = sphi %s1147_s15, %s1329_s15  }
   0x5   : > { %p24_p0 = scmp.ge.s32.totalorder %s23_s22, 3  ;;  %p42_p1 = scmp.ne.s32.totalorder %s1099_s16, %s1095_s15 }
   0x6   : > { %p43_p2 = scmp.eq.s32.totalorder %s1119_s21, 0  ;;  %s35_s27 = sadd.s32 1, %s1099_s16 }
   0x7   : > { %s1336_s22 = smov (%p24_p0, %s23_s22), 0  ;;  %s1338_s23 = smov (!%p24_p0, %s26_s23), %s1115_s20 }
   0x8   : > { %p44_p3 = por %p43_p2, %p42_p1  ;;  %p28_p4 = scmp.ge.s32.totalorder %s1338_s23, 3 }
   0x9   : > { %s31_s24 = ssub.s32 %s1111_s19, %s1336_s22  ;;  %p855_p6 = scmp.ge.s32.totalorder %s1119_s21, 9 }
   0xa   : > { %s1340_s23 = smov (%p28_p4, %s1338_s23), 0 }
   0xb   : > { %s30_s25 = ssub.s32 %s1115_s20, %s1340_s23  ;;  %168 = sbr.rel (%p855_p6) target bundleno = 39 (0x27), region = 24 }
   0xc   : > { %s32_s26 = sor.u32 %s31_s24, %s30_s25 }
   0xd   : > { %p33_p5 = scmp.eq.s32.totalorder %s32_s26, 0 }
   0xf   : > { %s1198_s28 = scalar_select %p33_p5, %s1099_s16, %s35_s27  }
  0x10   : > { %171 = sbr.rel (!%p44_p3) target bundleno = 39 (0x27), region = 28  ;;  %s173_s29 = sand.u32 (%p44_p3), 1, %s1099_s16  }
  0x11   : > { %s1006_s30 = smul.u32 (%p44_p3), 48, %s1115_s20  ;;  %s856_s5 = sshll.u32 (%p44_p3), %s173_s29, 6 }
  0x12   : > { %s175_s11 = scalar_lea.vmem (%p44_p3), [#allocation3], %s856_s5 }
  0x13   : > { %s178_s6 = sadd.s32 (%p44_p3), %s1111_s19, %s1006_s30 }
  0x14   : > { %s859_s7 = sshll.u32 (%p44_p3), %s178_s6, 2 }
  0x15   : > { %s1207_s10 = scalar_lea.vmem %s1324_s0, %s859_s7 }
  0x16   : > { %v197_v0 = vld [vmem:[%s1207_s10] sm:$0xf]  ;;  %v199_v1 = vld [vmem:[%s1207_s10 + $0xc] sm:$0xf]  ;;  %v201_v2 = vld [vmem:[%s1207_s10 + $0x18] sm:$0xf] }
  0x17   : > { %198 = vst [vmem:[%s175_s11] sm:$0xf] %v197_v0  ;;  %v203_v3 = vld [vmem:[%s1207_s10 + $0x24] sm:$0xf]  ;;  %v205_v4 = vld [vmem:[%s1207_s10 + $0x30] sm:$0xf] }
  0x18   : > { %200 = vst [vmem:[%s175_s11 + $0x4] sm:$0xf] %v199_v1  ;;  %v207_v5 = vld [vmem:[%s1207_s10 + $0x3c] sm:$0xf]  ;;  %v209_v6 = vld [vmem:[%s1207_s10 + $0x48] sm:$0xf] }
  0x19   : > { %202 = vst [vmem:[%s175_s11 + $0x8] sm:$0xf] %v201_v2  ;;  %v211_v7 = vld [vmem:[%s1207_s10 + $0x54] sm:$0xf]  ;;  %v213_v8 = vld [vmem:[%s1207_s10 + $0x60] sm:$0xf] }
  0x1a   : > { %204 = vst [vmem:[%s175_s11 + $0xc] sm:$0xf] %v203_v3  ;;  %v215_v9 = vld [vmem:[%s1207_s10 + $0x6c] sm:$0xf]  ;;  %v217_v10 = vld [vmem:[%s1207_s10 + $0x78] sm:$0xf] }
  0x1b   : > { %206 = vst [vmem:[%s175_s11 + $0x10] sm:$0xf] %v205_v4  ;;  %v219_v11 = vld [vmem:[%s1207_s10 + $0x84] sm:$0xf]  ;;  %v221_v12 = vld [vmem:[%s1207_s10 + $0x90] sm:$0xf] }
  0x1c   : > { %208 = vst [vmem:[%s175_s11 + $0x14] sm:$0xf] %v207_v5  ;;  %v223_v13 = vld [vmem:[%s1207_s10 + $0x9c] sm:$0xf]  ;;  %v225_v14 = vld [vmem:[%s1207_s10 + $0xa8] sm:$0xf] }
  0x1d   : > { %210 = vst [vmem:[%s175_s11 + $0x18] sm:$0xf] %v209_v6  ;;  %v227_v15 = vld [vmem:[%s1207_s10 + $0xb4] sm:$0xf] }
  0x1e   : > { %212 = vst [vmem:[%s175_s11 + $0x1c] sm:$0xf] %v211_v7 }
  0x1f   : > { %214 = vst [vmem:[%s175_s11 + $0x20] sm:$0xf] %v213_v8 }
  0x20   : > { %216 = vst [vmem:[%s175_s11 + $0x24] sm:$0xf] %v215_v9 }
  0x21   : > { %218 = vst [vmem:[%s175_s11 + $0x28] sm:$0xf] %v217_v10 }
  0x22   : > { %220 = vst [vmem:[%s175_s11 + $0x2c] sm:$0xf] %v219_v11 }
  0x23   : > { %222 = vst [vmem:[%s175_s11 + $0x30] sm:$0xf] %v221_v12 }
  0x24   : > { %224 = vst [vmem:[%s175_s11 + $0x34] sm:$0xf] %v223_v13 }
  0x25   : > { %226 = vst [vmem:[%s175_s11 + $0x38] sm:$0xf] %v225_v14 }
  0x26   : > { %228 = vst [vmem:[%s175_s11 + $0x3c] sm:$0xf] %v227_v15 }
  0x27 PF: > { %p860_p7 = scmp.ge.s32.totalorder %s1119_s21, 1  ;;  %p292_p8 = scmp.lt.s32.totalorder %s1119_s21, 10 }
  0x29   : > { %p293_p9 = pnand %p860_p7, %p292_p8 }
  0x2a   : > { %s299_s12 = sand.u32 (!%p293_p9), 1, %s1095_s15   ;;  %s862_s13 = sshll.u32 (!%p293_p9), %s1103_s17, 4 }
  0x2b   : > { %296 = sbr.rel (%p293_p9) target bundleno = 536 (0x218), region = 73  ;;  %s861_s14 = sshll.u32 (!%p293_p9), %s299_s12, 6 }
  0x2c   : > { %p331_p10 = scmp.lt.s32.totalorder (!%p293_p9), %s862_s13, 47  ;;  %s864_s24 = sshll.u32 (!%p293_p9), %s1107_s18, 4 }
  0x2d   : > { %p337_p11 = scmp.lt.s32.totalorder (!%p293_p9), %s864_s24, 47  ;;  %s1240_s15 = scalar_lea.vmem (!%p293_p9), [#allocation3], %s861_s14 }
  0x2e   : > { %p866_p12 = scmp.ne.s32.totalorder (!%p293_p9), %s1103_s17, 0 }
  0x30   : > { %s1342_s13 = smov (!%p331_p10, %s862_s13), 47  ;;  %s1344_s24 = smov (!%p337_p11, %s864_s24), 47 }
  0x31   : > { %s863_s25 = sshll.u32 %s1342_s13, 2  ;;  %s865_s30 = sshll.u32 %s1344_s24, 3 }
  0x32   : > { %s1233_s29 = scalar_lea.vmem %s1325_s1, %s863_s25  ;;  %s1238_s7 = scalar_lea.vmem %s1328_s4, %s865_s30 }
  0x33   : > { %345 = sbr.rel (%p866_p12) target bundleno = 73 (0x49), region = 81 }
  0x38   : > { %v1121_v16 = vmov 0.0  }
  0x39   : > { %346 = vst [vmem:[#allocation2 + $0x30] sm:$0xff] %v1121_v16 }
  0x3a   : > { %347 = vst [vmem:[#allocation2] sm:$0xff] %v1121_v16 }
  0x3b   : > { %348 = vst [vmem:[#allocation2 + $0x58] sm:$0xff] %v1121_v16 }
  0x3c   : > { %349 = vst [vmem:[#allocation2 + $0x18] sm:$0xff] %v1121_v16 }
  0x3d   : > { %350 = vst [vmem:[#allocation2 + $0x50] sm:$0xff] %v1121_v16 }
  0x3e   : > { %351 = vst [vmem:[#allocation2 + $0x68] sm:$0xff] %v1121_v16 }
  0x3f   : > { %352 = vst [vmem:[#allocation2 + $0x8] sm:$0xff] %v1121_v16 }
  0x40   : > { %353 = vst [vmem:[#allocation2 + $0x48] sm:$0xff] %v1121_v16 }
  0x41   : > { %354 = vst [vmem:[#allocation2 + $0x40] sm:$0xff] %v1121_v16 }
  0x42   : > { %355 = vst [vmem:[#allocation2 + $0x20] sm:$0xff] %v1121_v16 }
  0x43   : > { %356 = vst [vmem:[#allocation2 + $0x10] sm:$0xff] %v1121_v16 }
  0x44   : > { %357 = vst [vmem:[#allocation2 + $0x38] sm:$0xff] %v1121_v16 }
  0x45   : > { %358 = vst [vmem:[#allocation2 + $0x60] sm:$0xff] %v1121_v16 }
  0x46   : > { %359 = vst [vmem:[#allocation2 + $0x70] sm:$0xff] %v1121_v16 }
  0x47   : > { %360 = vst [vmem:[#allocation2 + $0x78] sm:$0xff] %v1121_v16 }
  0x48   : > { %361 = vst [vmem:[#allocation2 + $0x28] sm:$0xff] %v1121_v16 }
  0x49 PF: > { %v981_v17 = vld [vmem:[%s1326_s2 + $0x38] sm:$0xff]  ;;  %v980_v18 = vld [vmem:[%s1326_s2 + $0x30] sm:$0xff]  ;;  %v979_v19 = vld [vmem:[%s1326_s2 + $0x28] sm:$0xff]  ;;  %p963_p13 = scmp.ne.s32.totalorder %s1103_s17, 2 }
  0x4a   : > { %990 = vmatpush.bf16.msra.mxu2 %v981_v17  ;;  %490 = vmatpush.bf16.msra.mxu0 %v981_v17  ;;  %v978_v20 = vld [vmem:[%s1326_s2 + $0x20] sm:$0xff]  ;;  %v977_v21 = vld [vmem:[%s1326_s2 + $0x18] sm:$0xff]  ;;  %v976_v22 = vld [vmem:[%s1326_s2 + $0x10] sm:$0xff] }
  0x4b   : > { %v975_v23 = vld [vmem:[%s1326_s2 + $0x8] sm:$0xff]  ;;  %v974_v24 = vld [vmem:[%s1326_s2] sm:$0xff]  ;;  %v972_v29 = vld [vmem:[%s1233_s29 + $0x30] sm:$0xff] }
  0x4c   : > { %v970_v25 = vld [vmem:[%s1233_s29 + $0x20] sm:$0xff]  ;;  %v971_v27 = vld [vmem:[%s1233_s29 + $0x28] sm:$0xff]  ;;  %v968_v30 = vld [vmem:[%s1233_s29 + $0x10] sm:$0xff] }
  0x4d   : > { %v966_v26 = vld [vmem:[%s1233_s29] sm:$0xff]  ;;  %v967_v28 = vld [vmem:[%s1233_s29 + $0x8] sm:$0xff]  ;;  %v973_v31 = vld [vmem:[%s1233_s29 + $0x38] sm:$0xff] }
  0x4e   : > { %991 = vmatpush.bf16.msra.mxu2 %v980_v18  ;;  %491 = vmatpush.bf16.msra.mxu0 %v980_v18  ;;  %v969_v32 = vld [vmem:[%s1233_s29 + $0x18] sm:$0xff]  ;;  %v982_v57 = vld [vmem:[%s1240_s15] sm:$0xff]  ;;  %v983_v59 = vld [vmem:[%s1240_s15 + $0x8] sm:$0xff] }
  0x4f   : > { %v986_v58 = vld [vmem:[%s1240_s15 + $0x20] sm:$0xff]  ;;  %v987_v60 = vld [vmem:[%s1240_s15 + $0x28] sm:$0xff]  ;;  %v984_v61 = vld [vmem:[%s1240_s15 + $0x10] sm:$0xff] }
  0x50   : > { %v988_v62 = vld [vmem:[%s1240_s15 + $0x30] sm:$0xff]  ;;  %v985_v63 = vld [vmem:[%s1240_s15 + $0x18] sm:$0xff]  ;;  %v547_v4 = vld [vmem:[#allocation2 + $0x40] sm:$0xff] }
  0x51   : > { %v989_v0 = vld [vmem:[%s1240_s15 + $0x38] sm:$0xff]  ;;  %v539_v1 = vld [vmem:[#allocation2 + $0x30] sm:$0xff]  ;;  %v540_v6 = vld [vmem:[#allocation2] sm:$0xff] }
  0x52   : > { %992 = vmatpush.bf16.msra.mxu2 %v979_v19  ;;  %492 = vmatpush.bf16.msra.mxu0 %v979_v19  ;;  %v548_v10 = vld [vmem:[#allocation2 + $0x20] sm:$0xff]  ;;  %v541_v12 = vld [vmem:[#allocation2 + $0x58] sm:$0xff]  ;;  %v549_v16 = vld [vmem:[#allocation2 + $0x10] sm:$0xff] }
  0x53   : > { %v542_v18 = vld [vmem:[#allocation2 + $0x18] sm:$0xff] }
  0x56   : > { %993 = vmatpush.bf16.msra.mxu2 %v978_v20  ;;  %493 = vmatpush.bf16.msra.mxu0 %v978_v20 }
  0x5a   : > { %994 = vmatpush.bf16.msra.mxu2 %v977_v21  ;;  %494 = vmatpush.bf16.msra.mxu0 %v977_v21 }
  0x5e   : > { %995 = vmatpush.bf16.msra.mxu2 %v976_v22  ;;  %495 = vmatpush.bf16.msra.mxu0 %v976_v22  ;;  %v550_v22 = vld [vmem:[#allocation2 + $0x38] sm:$0xff] }
  0x62   : > { %996 = vmatpush.bf16.msra.mxu2 %v975_v23  ;;  %496 = vmatpush.bf16.msra.mxu0 %v975_v23 }
  0x66   : > { %997 = vmatpush.bf16.msra.mxu2 %v974_v24  ;;  %497 = vmatpush.bf16.msra.mxu0 %v974_v24  ;;  %v543_v24 = vld [vmem:[#allocation2 + $0x50] sm:$0xff] }
  0x69   : > { %518 = vmatmul.bf16.vlgmr.msra.gmra.mxu2 %v970_v25  ;;  %498 = vmatmul.bf16.vlgmr.msra.gmra.mxu0 %v966_v26 }
  0x79   : > { %523 = vmatmul.bf16.gmra.mxu2 %v971_v27  ;;  %503 = vmatmul.bf16.gmra.mxu0 %v967_v28  ;;  %v551_v28 = vld [vmem:[#allocation2 + $0x60] sm:$0xff] }
  0x89   : > { %528 = vmatmul.bf16.gmra.mxu2 %v972_v29  ;;  %508 = vmatmul.bf16.gmra.mxu0 %v968_v30  ;;  %v544_v30 = vld [vmem:[#allocation2 + $0x68] sm:$0xff] }
  0x99   : > { %533 = vmatmul.bf16.gmra.mxu2 %v973_v31  ;;  %513 = vmatmul.bf16.gmra.mxu0 %v969_v32 }
  0xe6   : > { %v499_v34 = vpop.f32.mrf.mxu0 }
  0xec   : > { %v519_v33 = vpop.f32.mrf.mxu2 }
  0xee   : > { %v501_v36 = vpop.f32.mrf.mxu0 }
  0xef   : > { %v571_v56 = vpack.c.bf16 %v501_v36, %v499_v34  ;;  %v552_v34 = vld [vmem:[#allocation2 + $0x70] sm:$0xff]  ;;  %v545_v36 = vld [vmem:[#allocation2 + $0x8] sm:$0xff] }
  0xf4   : > { %v521_v35 = vpop.f32.mrf.mxu2 }
  0xf5   : > { %v575_v51 = vpack.c.bf16 %v521_v35, %v519_v33 }
  0xf6   : > { %v504_v38 = vpop.f32.mrf.mxu0 }
  0xfc   : > { %v524_v37 = vpop.f32.mrf.mxu2 }
  0xfe   : > { %v506_v40 = vpop.f32.mrf.mxu0 }
  0xff   : > { %v572_v55 = vpack.c.bf16 %v506_v40, %v504_v38  ;;  %v553_v40 = vld [vmem:[#allocation2 + $0x78] sm:$0xff] }
 0x104   : > { %v526_v39 = vpop.f32.mrf.mxu2 }
 0x105   : > { %v576_v50 = vpack.c.bf16 %v526_v39, %v524_v37 }
 0x106   : > { %v509_v42 = vpop.f32.mrf.mxu0 }
 0x10c   : > { %v529_v41 = vpop.f32.mrf.mxu2 }
 0x10e   : > { %v511_v45 = vpop.f32.mrf.mxu0 }
 0x10f   : > { %v573_v54 = vpack.c.bf16 %v511_v45, %v509_v42  ;;  %v546_v42 = vld [vmem:[#allocation2 + $0x48] sm:$0xff] }
 0x114   : > { %v531_v43 = vpop.f32.mrf.mxu2 }
 0x115   : > { %v577_v49 = vpack.c.bf16 %v531_v43, %v529_v41 }
 0x116   : > { %v514_v48 = vpop.f32.mrf.mxu0 }
 0x11c   : > { %v534_v44 = vpop.f32.mrf.mxu2 }
 0x11e   : > { %v516_v52 = vpop.f32.mrf.mxu0 }
 0x11f   : > { %v574_v53 = vpack.c.bf16 %v516_v52, %v514_v48 }
 0x124   : > { %v536_v46 = vpop.f32.mrf.mxu2 }
 0x125   : > { %v578_v47 = vpack.c.bf16 %v536_v46, %v534_v44  ;;  %v554_v46 = vld [vmem:[#allocation2 + $0x28] sm:$0xff] }
 0x127   : > { %627 = vmatpush.bf16.msra.mxu1 %v578_v47  ;;  %998 = vmatpush.bf16.msra.mxu3 %v578_v47 }
 0x12b   : > { %628 = vmatpush.bf16.msra.mxu1 %v577_v49  ;;  %999 = vmatpush.bf16.msra.mxu3 %v577_v49 }
 0x12f   : > { %629 = vmatpush.bf16.msra.mxu1 %v576_v50  ;;  %1000 = vmatpush.bf16.msra.mxu3 %v576_v50 }
 0x133   : > { %630 = vmatpush.bf16.msra.mxu1 %v575_v51  ;;  %1001 = vmatpush.bf16.msra.mxu3 %v575_v51 }
 0x137   : > { %631 = vmatpush.bf16.msra.mxu1 %v574_v53  ;;  %1002 = vmatpush.bf16.msra.mxu3 %v574_v53 }
 0x13b   : > { %632 = vmatpush.bf16.msra.mxu1 %v573_v54  ;;  %1003 = vmatpush.bf16.msra.mxu3 %v573_v54 }
 0x13f   : > { %633 = vmatpush.bf16.msra.mxu1 %v572_v55  ;;  %1004 = vmatpush.bf16.msra.mxu3 %v572_v55 }
 0x143   : > { %634 = vmatpush.bf16.msra.mxu1 %v571_v56  ;;  %1005 = vmatpush.bf16.msra.mxu3 %v571_v56 }
 0x146   : > { %635 = vmatmul.bf16.vlgmr.msra.gmra.mxu1 %v982_v57  ;;  %655 = vmatmul.bf16.vlgmr.msra.gmra.mxu3 %v986_v58 }
 0x156   : > { %640 = vmatmul.bf16.gmra.mxu1 %v983_v59  ;;  %660 = vmatmul.bf16.gmra.mxu3 %v987_v60 }
 0x166   : > { %645 = vmatmul.bf16.gmra.mxu1 %v984_v61  ;;  %665 = vmatmul.bf16.gmra.mxu3 %v988_v62 }
 0x176   : > { %650 = vmatmul.bf16.gmra.mxu1 %v985_v63  ;;  %670 = vmatmul.bf16.gmra.mxu3 %v989_v0 }
 0x1c3   : > { %v636_v2 = vpop.f32.mrf.mxu1 }
 0x1c4   : > { %v676_v3 = vadd.f32 %v636_v2, %v539_v1 }
 0x1c6   : > { %692 = vst [vmem:[#allocation2 + $0x30] sm:$0xff] %v676_v3 }
 0x1c9   : > { %v656_v5 = vpop.f32.mrf.mxu3 }
 0x1ca   : > { %v684_v7 = vadd.f32 %v656_v5, %v547_v4 }
 0x1cb   : > { %v638_v8 = vpop.f32.mrf.mxu1 }
 0x1cc   : > { %700 = vst [vmem:[#allocation2 + $0x40] sm:$0xff] %v684_v7  ;;  %v677_v9 = vadd.f32 %v638_v8, %v540_v6 }
 0x1ce   : > { %693 = vst [vmem:[#allocation2] sm:$0xff] %v677_v9 }
 0x1d1   : > { %v658_v11 = vpop.f32.mrf.mxu3 }
 0x1d2   : > { %v685_v13 = vadd.f32 %v658_v11, %v548_v10 }
 0x1d3   : > { %v641_v14 = vpop.f32.mrf.mxu1 }
 0x1d4   : > { %701 = vst [vmem:[#allocation2 + $0x20] sm:$0xff] %v685_v13  ;;  %v678_v15 = vadd.f32 %v641_v14, %v541_v12 }
 0x1d6   : > { %694 = vst [vmem:[#allocation2 + $0x58] sm:$0xff] %v678_v15 }
 0x1d9   : > { %v661_v17 = vpop.f32.mrf.mxu3 }
 0x1da   : > { %v686_v19 = vadd.f32 %v661_v17, %v549_v16 }
 0x1db   : > { %v643_v20 = vpop.f32.mrf.mxu1 }
 0x1dc   : > { %702 = vst [vmem:[#allocation2 + $0x10] sm:$0xff] %v686_v19  ;;  %v679_v21 = vadd.f32 %v643_v20, %v542_v18 }
 0x1de   : > { %695 = vst [vmem:[#allocation2 + $0x18] sm:$0xff] %v679_v21 }
 0x1e1   : > { %v663_v23 = vpop.f32.mrf.mxu3 }
 0x1e2   : > { %v687_v25 = vadd.f32 %v663_v23, %v550_v22 }
 0x1e3   : > { %v646_v26 = vpop.f32.mrf.mxu1 }
 0x1e4   : > { %703 = vst [vmem:[#allocation2 + $0x38] sm:$0xff] %v687_v25  ;;  %v680_v27 = vadd.f32 %v646_v26, %v543_v24 }
 0x1e6   : > { %696 = vst [vmem:[#allocation2 + $0x50] sm:$0xff] %v680_v27 }
 0x1e9   : > { %v666_v29 = vpop.f32.mrf.mxu3 }
 0x1ea   : > { %v688_v31 = vadd.f32 %v666_v29, %v551_v28 }
 0x1eb   : > { %v648_v32 = vpop.f32.mrf.mxu1 }
 0x1ec   : > { %704 = vst [vmem:[#allocation2 + $0x60] sm:$0xff] %v688_v31  ;;  %v681_v33 = vadd.f32 %v648_v32, %v544_v30 }
 0x1ee   : > { %697 = vst [vmem:[#allocation2 + $0x68] sm:$0xff] %v681_v33 }
 0x1f1   : > { %v668_v35 = vpop.f32.mrf.mxu3 }
 0x1f2   : > { %v689_v37 = vadd.f32 %v668_v35, %v552_v34 }
 0x1f3   : > { %v651_v38 = vpop.f32.mrf.mxu1 }
 0x1f4   : > { %705 = vst [vmem:[#allocation2 + $0x70] sm:$0xff] %v689_v37  ;;  %v682_v39 = vadd.f32 %v651_v38, %v545_v36 }
 0x1f6   : > { %698 = vst [vmem:[#allocation2 + $0x8] sm:$0xff] %v682_v39 }
 0x1f9   : > { %v671_v41 = vpop.f32.mrf.mxu3 }
 0x1fa   : > { %v690_v43 = vadd.f32 %v671_v41, %v553_v40 }
 0x1fb   : > { %v653_v44 = vpop.f32.mrf.mxu1 }
 0x1fc   : > { %706 = vst [vmem:[#allocation2 + $0x78] sm:$0xff] %v690_v43  ;;  %v683_v45 = vadd.f32 %v653_v44, %v546_v42 }
 0x1fe   : > { %699 = vst [vmem:[#allocation2 + $0x48] sm:$0xff] %v683_v45 }
 0x200   : > { %711 = sbr.rel (%p963_p13) target bundleno = 536 (0x218), region = 85 }
 0x201   : > { %v673_v47 = vpop.f32.mrf.mxu3 }
 0x202   : > { %v691_v48 = vadd.f32 %v673_v47, %v554_v46 }
 0x204   : > { %707 = vst [vmem:[#allocation2 + $0x28] sm:$0xff] %v691_v48 }
 0x205   : > { %v712_v49 = vld [vmem:[#allocation2 + $0x30] sm:$0xff]  ;;  %v1064_v50 = vld [vmem:[%s1327_s3] ss:$0 sm:$0xff]  ;;  %v714_v52 = vld [vmem:[#allocation2 + $0x58] sm:$0xff] }
 0x206   : > { %v713_v51 = vld [vmem:[#allocation2] sm:$0xff]  ;;  %v715_v53 = vld [vmem:[#allocation2 + $0x18] sm:$0xff]  ;;  %v732_v54 = vadd.f32 %v1064_v50, %v712_v49  ;;  %v734_v56 = vadd.f32 %v1064_v50, %v714_v52  ;;  %v716_v57 = vld [vmem:[#allocation2 + $0x50] sm:$0xff] }
 0x207   : > { %v733_v55 = vadd.f32 %v1064_v50, %v713_v51  ;;  %v717_v58 = vld [vmem:[#allocation2 + $0x68] sm:$0xff]  ;;  %v735_v59 = vadd.f32 %v1064_v50, %v715_v53  ;;  %v736_v61 = vadd.f32 %v1064_v50, %v716_v57  ;;  %v720_v0 = vld [vmem:[#allocation2 + $0x40] sm:$0xff]  ;;  %v722_v4 = vld [vmem:[#allocation2 + $0x10] sm:$0xff] }
 0x208   : > { %v718_v60 = vld [vmem:[#allocation2 + $0x8] sm:$0xff]  ;;  %748 = vst [vmem:[%s1238_s7] sm:$0xff] %v732_v54  ;;  %v737_v63 = vadd.f32 %v1064_v50, %v717_v58  ;;  %v721_v2 = vld [vmem:[#allocation2 + $0x20] sm:$0xff]  ;;  %v740_v5 = vadd.f32 %v1064_v50, %v720_v0  ;;  %v723_v6 = vld [vmem:[#allocation2 + $0x38] sm:$0xff]  ;;  %v742_v9 = vadd.f32 %v1064_v50, %v722_v4 }
 0x209   : > { %v719_v62 = vld [vmem:[#allocation2 + $0x48] sm:$0xff]  ;;  %749 = vst [vmem:[%s1238_s7 + $0x8] sm:$0xff] %v733_v55  ;;  %v738_v1 = vadd.f32 %v1064_v50, %v718_v60  ;;  %v741_v7 = vadd.f32 %v1064_v50, %v721_v2  ;;  %v724_v8 = vld [vmem:[#allocation2 + $0x60] sm:$0xff]  ;;  %v725_v10 = vld [vmem:[#allocation2 + $0x70] sm:$0xff]  ;;  %v743_v11 = vadd.f32 %v1064_v50, %v723_v6 }
 0x20a   : > { %750 = vst [vmem:[%s1238_s7 + $0x10] sm:$0xff] %v734_v56  ;;  %v739_v3 = vadd.f32 %v1064_v50, %v719_v62  ;;  %v726_v12 = vld [vmem:[#allocation2 + $0x78] sm:$0xff]  ;;  %v744_v13 = vadd.f32 %v1064_v50, %v724_v8  ;;  %v745_v15 = vadd.f32 %v1064_v50, %v725_v10 }
 0x20b   : > { %751 = vst [vmem:[%s1238_s7 + $0x18] sm:$0xff] %v735_v59  ;;  %v727_v14 = vld [vmem:[#allocation2 + $0x28] sm:$0xff]  ;;  %v746_v16 = vadd.f32 %v1064_v50, %v726_v12 }
 0x20c   : > { %752 = vst [vmem:[%s1238_s7 + $0x20] sm:$0xff] %v736_v61  ;;  %v747_v17 = vadd.f32 %v1064_v50, %v727_v14 }
 0x20d   : > { %753 = vst [vmem:[%s1238_s7 + $0x28] sm:$0xff] %v737_v63 }
 0x20e   : > { %754 = vst [vmem:[%s1238_s7 + $0x30] sm:$0xff] %v738_v1 }
 0x20f   : > { %755 = vst [vmem:[%s1238_s7 + $0x38] sm:$0xff] %v739_v3 }
 0x210   : > { %756 = vst [vmem:[%s1238_s7 + $0x40] sm:$0xff] %v740_v5 }
 0x211   : > { %757 = vst [vmem:[%s1238_s7 + $0x48] sm:$0xff] %v741_v7 }
 0x212   : > { %758 = vst [vmem:[%s1238_s7 + $0x50] sm:$0xff] %v742_v9 }
 0x213   : > { %759 = vst [vmem:[%s1238_s7 + $0x58] sm:$0xff] %v743_v11 }
 0x214   : > { %760 = vst [vmem:[%s1238_s7 + $0x60] sm:$0xff] %v744_v13 }
 0x215   : > { %761 = vst [vmem:[%s1238_s7 + $0x68] sm:$0xff] %v745_v15 }
 0x216   : > { %762 = vst [vmem:[%s1238_s7 + $0x70] sm:$0xff] %v746_v16 }
 0x217   : > { %763 = vst [vmem:[%s1238_s7 + $0x78] sm:$0xff] %v747_v17 }
 0x218 PF: > { %s14_s21 = sadd.s32 1, %s1119_s21   ;;  %s1329_s15 = smov %s1099_s16 }
 0x219   : > { %p11_p0 = scmp.ge.s32.totalorder %s14_s21, 11   ;;  %s1330_s16 = smov %s1198_s28 }
 0x21a   : > { %s1331_s17 = smov %s1111_s19  ;;  %s1332_s18 = smov %s1115_s20 }
 0x21b   : > { %s1333_s19 = smov %s1336_s22  ;;  %s1334_s20 = smov %s1340_s23 }
 0x21c   :  { %13 = sbr.rel (!%p11_p0) target bundleno = 4 (0x4), region = 123 }

// kernel: encoder_forward.2
= control target key start
LH: loop header
LB: loop body
LE: loop exit
PB: predicated region body
PF: predicated region fallthrough
CT: control target
= control target key end

     0   :  { %s1723_s0 = inlined_call_operand.hbm [shape: bf16[384,384], index: 0, kind: input, shape index: {}]   ;;  %s1724_s1 = inlined_call_operand.hbm [shape: bf16[384,128], index: 1, kind: input, shape index: {}]   ;;  %s1725_s2 = inlined_call_operand.hbm [shape: bf16[128,128], index: 2, kind: input, shape index: {}]   ;;  %s1726_s3 = inlined_call_operand.hbm [shape: f32[1,128], index: 3, kind: input, shape index: {}]   ;;  %s1727_s4 = inlined_call_operand.vmem [shape: bf16[384,128], index: 4, kind: output, shape index: {}]  }
   0x1   :  { %1736 = sst [smem:[#allocation19_spill]] %s1723_s0 }
   0x2   :  { %1737 = sst [smem:[#allocation20_spill]] %s1725_s2 }
   0x3   :  { %1738 = sst [smem:[#allocation21_spill]] %s1726_s3 }
   0x4   :  { %1739 = sst [smem:[#allocation22_spill]] %s1727_s4 }
   0x5   :  { %9 = vsyncpa [#allocation4], 0 }
   0x6   :  { %11 = vsyncpa [#allocation4 + $0x1], 0 }
   0x7   :  { %12 = vsyncpa [#allocation6], 0 }
   0x8   :  { %14 = vsyncpa [#allocation6 + $0x1], 0 }
   0x9   :  { %15 = vsyncpa [#allocation9], 0  ;;  %s1479_s15 = smov 0   ;;  %s1481_s16 = smov 0  }
   0xa   :  { %s1483_s17 = smov 0   ;;  %s1485_s18 = smov 0  }
   0xb   :  { %s1487_s19 = smov 0   ;;  %s1489_s20 = smov 0  }
   0xc   :  { %s1491_s21 = smov 0   ;;  %s1493_s22 = smov 0  }
   0xd   :  { %s1495_s23 = smov 0   ;;  %s1497_s24 = smov 0  }
   0xe   :  { %s1499_s25 = smov 0  }
   0xf LB: > { %1740 = sst [smem:[#allocation14_spill]] %s1430_s21  ;;  %s1728_s26 = sadd.s32 4294967295, %s1446_s25   ;;  %s1446_s25 = sphi %s1499_s25, %s21_s25   ;;  %s1442_s24 = sphi %s1497_s24, %s1762_s24   ;;  %s1438_s23 = sphi %s1495_s23, %s1770_s23   ;;  %s1434_s22 = sphi %s1493_s22, %s1760_s22   ;;  %s1430_s21 = sphi %s1491_s21, %s1769_s21   ;;  %s1426_s20 = sphi %s1489_s20, %s1768_s20   ;;  %s1422_s19 = sphi %s1487_s19, %s1767_s19   ;;  %s1418_s18 = sphi %s1485_s18, %s1766_s18   ;;  %s1414_s17 = sphi %s1483_s17, %s1765_s17   ;;  %s1410_s16 = sphi %s1481_s16, %s1764_s16   ;;  %s1406_s15 = sphi %s1479_s15, %s1763_s15  }
  0x10   : > { %1741 = sst [smem:[#allocation15_spill]] %s1442_s24  ;;  %p55_p0 = scmp.ne.s32.totalorder %s1422_s19, %s1418_s18 }
  0x11   : > { %p1534_p1 = scmp.eq.s32.totalorder %s1728_s26, 0  ;;  %p81_p2 = scmp.ne.s32.totalorder %s1410_s16, %s1406_s15 }
  0x12   : > { %p891_p3 = scmp.ge.s32.totalorder %s1446_s25, 1  ;;  %p160_p4 = scmp.lt.s32.totalorder %s1446_s25, 10 }
  0x13   : > { %p1543_p5 = por %p1534_p1, %p55_p0  ;;  %p1549_p6 = por %p81_p2, %p1534_p1 }
  0x14   : > { %p1553_p7 = pnand %p891_p3, %p160_p4  ;;  %s1746_s2 = sld [smem:[#allocation20_spill]] }
  0x15   : > { %s1448_s8 = smov [#allocation7]   ;;  %s1747_s3 = sld [smem:[#allocation21_spill]] }
  0x16   : > { %p1110_p8 = pneg %p1553_p7  ;;  %s173_s9 = sshll.u32 %s1448_s8, 4  ;;  %s174_s9 = int_to_ptr.vmem [resolvable:$true] %s173_s9 }
  0x17   : > { %s1729_s13 = smov 64   ;;  %s1731_s14 = smov 4  }
  0x18   : > { %p1111_p9 = pnand %p1110_p8, %p1534_p1  ;;  %s1451_s15 = smov [#allocation8]  }
  0x19   : > { %s188_s18 = sshll.u32 %s1451_s15, 4  ;;  %s30_s5 = sadd.s32 1, %s1438_s23  ;;  %s189_s18 = int_to_ptr.vmem [resolvable:$true] %s188_s18 }
  0x1a   : > { %s171_s7 = sshll.u32 %s1746_s2, 4  ;;  %s33_s6 = sadd.s32 1, %s1442_s24  ;;  %s172_s7 = int_to_ptr.hbm [resolvable:$true] %s171_s7 }
  0x1b   : > { %s186_s12 = sshll.u32 %s1747_s3, 4  ;;  %p31_p10 = scmp.ge.s32.totalorder %s30_s5, 3  ;;  %s187_s12 = int_to_ptr.hbm [resolvable:$true] %s186_s12 }
  0x1c   : > { %1113 = dma.hbm_to_vmem [thread:$0]  (!%p1111_p9), %s172_s7, 1024, %s174_s9, [#allocation6], %s1729_s13, %s1729_s13, %s1731_s14  }
  0x1d   : > { %1116 = dma.hbm_to_vmem [thread:$0]  (!%p1111_p9), %s187_s12, 16, %s189_s18, [#allocation9]  }
  0x1e   : > { %s42_s8 = sadd.s32 1, %s1426_s20  ;;  %p49_p11 = scmp.ne.s32.totalorder %s1426_s20, %s1422_s19 }
  0x1f   : > { %p50_p12 = scmp.eq.s32.totalorder %s1446_s25, 0  ;;  %s1772_s5 = smov (%p31_p10, %s30_s5), 0 }
  0x20   : > { %1748 = sst [smem:[#allocation16_spill]] %s1772_s5  ;;  %s1774_s6 = smov (!%p31_p10, %s33_s6), %s1442_s24 }
  0x21   : > { %s1581_s7 = ssub.s32 %s1438_s23, %s1772_s5  ;;  %p1585_p13 = por %p50_p12, %p49_p11 }
  0x22   : > { %p35_p0 = scmp.ge.s32.totalorder %s1774_s6, 3  ;;  %p66_p2 = scmp.eq.s32.totalorder %s1581_s7, 0 }
  0x23   : > { %p1126_p3 = scmp.lt.s32.totalorder %s1446_s25, 9  ;;  %s199_s10 = sand.u32 1, %s1426_s20  }
  0x24   : > { %s1776_s6 = smov (%p35_p0, %s1774_s6), 0  ;;  %s895_s11 = sshll.u32 %s199_s10, 6 }
  0x25   : > { %1750 = sst [smem:[#allocation17_spill]] %s1776_s6  ;;  %s37_s12 = ssub.s32 %s1442_s24, %s1776_s6 }
  0x26   : > { %s39_s15 = sor.u32 %s1581_s7, %s37_s12  ;;  %s1097_s18 = smul.u32 48, %s1442_s24 }
  0x27   : > { %p40_p4 = scmp.eq.s32.totalorder %s39_s15, 0  ;;  %s203_s26 = scalar_lea.vmem [#allocation3], %s895_s11 }
  0x28   : > { %s213_s13 = sshll.u32 %s203_s26, 4  ;;  %s208_s14 = sadd.s32 %s1438_s23, %s1097_s18  ;;  %s214_s13 = int_to_ptr.vmem [resolvable:$true] %s213_s13 }
  0x29   : > { %s1600_s2 = scalar_select %p40_p4, %s1426_s20, %s42_s8  }
  0x2a   : > { %s898_s3 = sshll.u32 %s208_s14, 2  ;;  %p1118_p8 = pnand %p1126_p3, %p1585_p13 }
  0x2b   : > { %1751 = sst [smem:[#allocation18_spill]] %s1600_s2  ;;  %s200_s11 = scalar_lea.sflag [#allocation4], %s199_s10 }
  0x2c   : > { %s1752_s0 = sld [smem:[#allocation19_spill]]  ;;  %s1452_s24 = smov 192  }
  0x2d   : > { %s1753_s26 = smov 4   ;;  %s1754_s21 = smov 64  }
  0x2e   : > { %s223_s18 = sand.u32 1, %s1446_s25   ;;  %s68_s4 = sadd.s32 1, %s1414_s17 }
  0x2f   : > { %p75_p9 = scmp.ne.s32.totalorder %s1414_s17, %s1410_s16  ;;  %s225_s8 = sand.u32 1, %s1414_s17  }
  0x30   : > { %s1618_s14 = scalar_select %p66_p2, %s1414_s17, %s68_s4  }
  0x31   : > { %p77_p10 = por %p75_p9, %p50_p12  ;;  %s1009_s9 = sshll.u32 %s1438_s23, 6 }
  0x32   : > { %s210_s15 = scalar_lea.hbm %s1752_s0, %s898_s3  ;;  %s899_s6 = sshll.u32 %s225_s8, 6 }
  0x33   : > { %s211_s5 = sshll.u32 %s210_s15, 4  ;;  %s232_s10 = scalar_lea.hbm %s1724_s1, %s1009_s9  ;;  %s212_s5 = int_to_ptr.hbm [resolvable:$true] %s211_s5 }
  0x34   : > { %1120 = dma.hbm_to_vmem [thread:$0]  (!%p1118_p8), %s212_s5, 1024, %s214_s13, %s200_s11, %s1452_s24, %s1754_s21, %s1753_s26  }
  0x35   : > { %s233_s15 = sshll.u32 %s232_s10, 4  ;;  %s227_s0 = scalar_lea.vmem [#allocation5], %s899_s6  ;;  %s234_s15 = int_to_ptr.hbm [resolvable:$true] %s233_s15 }
  0x36   : > { %s235_s2 = sshll.u32 %s227_s0, 4  ;;  %p1121_p11 = pnand %p1126_p3, %p77_p10  ;;  %s236_s2 = int_to_ptr.vmem [resolvable:$true] %s235_s2 }
  0x37   : > { %s224_s24 = scalar_lea.sflag [#allocation6], %s223_s18  ;;  %247 = sbr.rel (%p1553_p7) target bundleno = 560 (0x230), region = 36 }
  0x38   : > { %1123 = dma.hbm_to_vmem [thread:$0]  (!%p1121_p11), %s234_s15, 1024, %s236_s2, %s224_s24, %s1754_s21, %s1754_s21, %s1753_s26  }
  0x39   : > { %s249_s4 = sand.u32 (!%p1553_p7), 1, %s1422_s19  }
  0x3a   : > { %s903_s13 = sshll.u32 (!%p1553_p7), %s249_s4, 6  ;;  %s250_s5 = scalar_lea.sflag (!%p1553_p7), [#allocation4], %s249_s4 }
  0x3b   : > { %s1635_s7 = scalar_lea.vmem (!%p1553_p7), [#allocation3], %s903_s13 }
  0x3c   : > { %1389 = dma.done.wait (%p1543_p5), %s250_s5, 1024  }
  0x3d   : > { %1391 = vsyncadd (%p1543_p5), %s250_s5, 4294966272  ;;  %s1755_s0 = sadd.s32 4294967295, %s1446_s25   ;;  %s261_s21 = sand.u32 1, %s1410_s16  }
  0x3e   : > { %s259_s2 = sand.u32 1, %s1755_s0   ;;  %s904_s30 = sshll.u32 %s261_s21, 6 }
  0x3f   : > { %s260_s11 = scalar_lea.sflag [#allocation6], %s259_s2  ;;  %s1644_s26 = scalar_lea.vmem [#allocation5], %s904_s30 }
  0x40   : > { %1393 = dma.done.wait (%p1549_p6), %s260_s11, 1024  }
  0x41   : > { %1395 = vsyncadd (%p1549_p6), %s260_s11, 4294966272 }
  0x42   : > { %1397 = dma.done.wait (%p1534_p1), [#allocation6], 1024  }
  0x43   : > { %1399 = vsyncadd (%p1534_p1), [#allocation6], 4294966272 }
  0x44   : > { %1401 = dma.done.wait (%p1534_p1), [#allocation9], 16  }
  0x45   : > { %1403 = vsyncadd (%p1534_p1), [#allocation9], 4294967280  ;;  %s907_s28 = sshll.u32 %s1434_s22, 4  ;;  %s1756_s9 = sld [smem:[#allocation22_spill]] }
  0x46   : > { %p307_p5 = scmp.lt.s32.totalorder %s907_s28, 47  ;;  %s1757_s3 = sld [smem:[#allocation14_spill]] }
  0x48   : > { %s1778_s28 = smov (!%p307_p5, %s907_s28), 47 }
  0x49   : > { %s908_s18 = sshll.u32 %s1778_s28, 2 }
  0x4b   : > { %s1662_s6 = scalar_lea.vmem %s1756_s9, %s908_s18 }
  0x4c   : > { %p909_p6 = scmp.ne.s32.totalorder %s1757_s3, 0 }
  0x4e   : > { %315 = sbr.rel (%p909_p6) target bundleno = 100 (0x64), region = 56 }
  0x53   : > { %v1453_v0 = vmov 0.0  }
  0x54   : > { %316 = vst [vmem:[#allocation2 + $0x30] sm:$0xff] %v1453_v0 }
  0x55   : > { %317 = vst [vmem:[#allocation2] sm:$0xff] %v1453_v0 }
  0x56   : > { %318 = vst [vmem:[#allocation2 + $0x58] sm:$0xff] %v1453_v0 }
  0x57   : > { %319 = vst [vmem:[#allocation2 + $0x18] sm:$0xff] %v1453_v0 }
  0x58   : > { %320 = vst [vmem:[#allocation2 + $0x50] sm:$0xff] %v1453_v0 }
  0x59   : > { %321 = vst [vmem:[#allocation2 + $0x68] sm:$0xff] %v1453_v0 }
  0x5a   : > { %322 = vst [vmem:[#allocation2 + $0x8] sm:$0xff] %v1453_v0 }
  0x5b   : > { %323 = vst [vmem:[#allocation2 + $0x48] sm:$0xff] %v1453_v0 }
  0x5c   : > { %324 = vst [vmem:[#allocation2 + $0x40] sm:$0xff] %v1453_v0 }
  0x5d   : > { %325 = vst [vmem:[#allocation2 + $0x20] sm:$0xff] %v1453_v0 }
  0x5e   : > { %326 = vst [vmem:[#allocation2 + $0x10] sm:$0xff] %v1453_v0 }
  0x5f   : > { %327 = vst [vmem:[#allocation2 + $0x38] sm:$0xff] %v1453_v0 }
  0x60   : > { %328 = vst [vmem:[#allocation2 + $0x60] sm:$0xff] %v1453_v0 }
  0x61   : > { %329 = vst [vmem:[#allocation2 + $0x70] sm:$0xff] %v1453_v0 }
  0x62   : > { %330 = vst [vmem:[#allocation2 + $0x78] sm:$0xff] %v1453_v0 }
  0x63   : > { %331 = vst [vmem:[#allocation2 + $0x28] sm:$0xff] %v1453_v0 }
  0x64 PF: > { %v1025_v1 = vld [vmem:[#allocation7 + $0x38] sm:$0xff]  ;;  %v1024_v2 = vld [vmem:[#allocation7 + $0x30] sm:$0xff]  ;;  %v1023_v3 = vld [vmem:[#allocation7 + $0x28] sm:$0xff]  ;;  %s1758_s22 = sld [smem:[#allocation14_spill]] }
  0x65   : > { %1081 = vmatpush.bf16.msra.mxu2 %v1025_v1  ;;  %460 = vmatpush.bf16.msra.mxu0 %v1025_v1  ;;  %v1022_v4 = vld [vmem:[#allocation7 + $0x20] sm:$0xff]  ;;  %v1021_v5 = vld [vmem:[#allocation7 + $0x18] sm:$0xff]  ;;  %v1020_v6 = vld [vmem:[#allocation7 + $0x10] sm:$0xff] }
  0x66   : > { %v1019_v7 = vld [vmem:[#allocation7 + $0x8] sm:$0xff]  ;;  %v1018_v8 = vld [vmem:[#allocation7] sm:$0xff]  ;;  %v1016_v13 = vld [vmem:[%s1644_s26 + $0x30] sm:$0xff] }
  0x67   : > { %v1014_v9 = vld [vmem:[%s1644_s26 + $0x20] sm:$0xff]  ;;  %v1015_v11 = vld [vmem:[%s1644_s26 + $0x28] sm:$0xff]  ;;  %v1012_v14 = vld [vmem:[%s1644_s26 + $0x10] sm:$0xff] }
  0x68   : > { %v1010_v10 = vld [vmem:[%s1644_s26] sm:$0xff]  ;;  %v1011_v12 = vld [vmem:[%s1644_s26 + $0x8] sm:$0xff]  ;;  %v1017_v15 = vld [vmem:[%s1644_s26 + $0x38] sm:$0xff] }
  0x69   : > { %1082 = vmatpush.bf16.msra.mxu2 %v1024_v2  ;;  %461 = vmatpush.bf16.msra.mxu0 %v1024_v2  ;;  %v1013_v16 = vld [vmem:[%s1644_s26 + $0x18] sm:$0xff]  ;;  %v1026_v41 = vld [vmem:[%s1635_s7] sm:$0xff]  ;;  %v1027_v43 = vld [vmem:[%s1635_s7 + $0x8] sm:$0xff] }
  0x6a   : > { %v1030_v42 = vld [vmem:[%s1635_s7 + $0x20] sm:$0xff]  ;;  %v1031_v44 = vld [vmem:[%s1635_s7 + $0x28] sm:$0xff]  ;;  %v1028_v45 = vld [vmem:[%s1635_s7 + $0x10] sm:$0xff]  ;;  %p1006_p1 = scmp.ne.s32.totalorder %s1758_s22, 2 }
  0x6b   : > { %v1032_v46 = vld [vmem:[%s1635_s7 + $0x30] sm:$0xff]  ;;  %v1029_v47 = vld [vmem:[%s1635_s7 + $0x18] sm:$0xff]  ;;  %v517_v52 = vld [vmem:[#allocation2 + $0x40] sm:$0xff] }
  0x6c   : > { %v1033_v48 = vld [vmem:[%s1635_s7 + $0x38] sm:$0xff]  ;;  %v509_v49 = vld [vmem:[#allocation2 + $0x30] sm:$0xff]  ;;  %v510_v54 = vld [vmem:[#allocation2] sm:$0xff] }
  0x6d   : > { %1083 = vmatpush.bf16.msra.mxu2 %v1023_v3  ;;  %462 = vmatpush.bf16.msra.mxu0 %v1023_v3  ;;  %v518_v58 = vld [vmem:[#allocation2 + $0x20] sm:$0xff]  ;;  %v511_v60 = vld [vmem:[#allocation2 + $0x58] sm:$0xff]  ;;  %v519_v0 = vld [vmem:[#allocation2 + $0x10] sm:$0xff] }
  0x6e   : > { %v512_v2 = vld [vmem:[#allocation2 + $0x18] sm:$0xff] }
  0x71   : > { %1084 = vmatpush.bf16.msra.mxu2 %v1022_v4  ;;  %463 = vmatpush.bf16.msra.mxu0 %v1022_v4 }
  0x75   : > { %1085 = vmatpush.bf16.msra.mxu2 %v1021_v5  ;;  %464 = vmatpush.bf16.msra.mxu0 %v1021_v5 }
  0x79   : > { %1086 = vmatpush.bf16.msra.mxu2 %v1020_v6  ;;  %465 = vmatpush.bf16.msra.mxu0 %v1020_v6  ;;  %v520_v6 = vld [vmem:[#allocation2 + $0x38] sm:$0xff] }
  0x7d   : > { %1087 = vmatpush.bf16.msra.mxu2 %v1019_v7  ;;  %466 = vmatpush.bf16.msra.mxu0 %v1019_v7 }
  0x81   : > { %1088 = vmatpush.bf16.msra.mxu2 %v1018_v8  ;;  %467 = vmatpush.bf16.msra.mxu0 %v1018_v8  ;;  %v513_v8 = vld [vmem:[#allocation2 + $0x50] sm:$0xff] }
  0x84   : > { %488 = vmatmul.bf16.vlgmr.msra.gmra.mxu2 %v1014_v9  ;;  %468 = vmatmul.bf16.vlgmr.msra.gmra.mxu0 %v1010_v10 }
  0x94   : > { %493 = vmatmul.bf16.gmra.mxu2 %v1015_v11  ;;  %473 = vmatmul.bf16.gmra.mxu0 %v1011_v12  ;;  %v521_v12 = vld [vmem:[#allocation2 + $0x60] sm:$0xff] }
  0xa4   : > { %498 = vmatmul.bf16.gmra.mxu2 %v1016_v13  ;;  %478 = vmatmul.bf16.gmra.mxu0 %v1012_v14  ;;  %v514_v14 = vld [vmem:[#allocation2 + $0x68] sm:$0xff] }
  0xb4   : > { %503 = vmatmul.bf16.gmra.mxu2 %v1017_v15  ;;  %483 = vmatmul.bf16.gmra.mxu0 %v1013_v16 }
 0x101   : > { %v469_v18 = vpop.f32.mrf.mxu0 }
 0x107   : > { %v489_v17 = vpop.f32.mrf.mxu2 }
 0x109   : > { %v471_v20 = vpop.f32.mrf.mxu0 }
 0x10a   : > { %v541_v40 = vpack.c.bf16 %v471_v20, %v469_v18  ;;  %v522_v18 = vld [vmem:[#allocation2 + $0x70] sm:$0xff]  ;;  %v515_v20 = vld [vmem:[#allocation2 + $0x8] sm:$0xff] }
 0x10f   : > { %v491_v19 = vpop.f32.mrf.mxu2 }
 0x110   : > { %v545_v35 = vpack.c.bf16 %v491_v19, %v489_v17 }
 0x111   : > { %v474_v22 = vpop.f32.mrf.mxu0 }
 0x117   : > { %v494_v21 = vpop.f32.mrf.mxu2 }
 0x119   : > { %v476_v24 = vpop.f32.mrf.mxu0 }
 0x11a   : > { %v542_v39 = vpack.c.bf16 %v476_v24, %v474_v22  ;;  %v523_v24 = vld [vmem:[#allocation2 + $0x78] sm:$0xff] }
 0x11f   : > { %v496_v23 = vpop.f32.mrf.mxu2 }
 0x120   : > { %v546_v34 = vpack.c.bf16 %v496_v23, %v494_v21 }
 0x121   : > { %v479_v26 = vpop.f32.mrf.mxu0 }
 0x127   : > { %v499_v25 = vpop.f32.mrf.mxu2 }
 0x129   : > { %v481_v29 = vpop.f32.mrf.mxu0 }
 0x12a   : > { %v543_v38 = vpack.c.bf16 %v481_v29, %v479_v26  ;;  %v516_v26 = vld [vmem:[#allocation2 + $0x48] sm:$0xff] }
 0x12f   : > { %v501_v27 = vpop.f32.mrf.mxu2 }
 0x130   : > { %v547_v33 = vpack.c.bf16 %v501_v27, %v499_v25 }
 0x131   : > { %v484_v32 = vpop.f32.mrf.mxu0 }
 0x137   : > { %v504_v28 = vpop.f32.mrf.mxu2 }
 0x139   : > { %v486_v36 = vpop.f32.mrf.mxu0 }
 0x13a   : > { %v544_v37 = vpack.c.bf16 %v486_v36, %v484_v32 }
 0x13f   : > { %v506_v30 = vpop.f32.mrf.mxu2 }
 0x140   : > { %v548_v31 = vpack.c.bf16 %v506_v30, %v504_v28  ;;  %v524_v30 = vld [vmem:[#allocation2 + $0x28] sm:$0xff] }
 0x142   : > { %597 = vmatpush.bf16.msra.mxu1 %v548_v31  ;;  %1089 = vmatpush.bf16.msra.mxu3 %v548_v31 }
 0x146   : > { %598 = vmatpush.bf16.msra.mxu1 %v547_v33  ;;  %1090 = vmatpush.bf16.msra.mxu3 %v547_v33 }
 0x14a   : > { %599 = vmatpush.bf16.msra.mxu1 %v546_v34  ;;  %1091 = vmatpush.bf16.msra.mxu3 %v546_v34 }
 0x14e   : > { %600 = vmatpush.bf16.msra.mxu1 %v545_v35  ;;  %1092 = vmatpush.bf16.msra.mxu3 %v545_v35 }
 0x152   : > { %601 = vmatpush.bf16.msra.mxu1 %v544_v37  ;;  %1093 = vmatpush.bf16.msra.mxu3 %v544_v37 }
 0x156   : > { %602 = vmatpush.bf16.msra.mxu1 %v543_v38  ;;  %1094 = vmatpush.bf16.msra.mxu3 %v543_v38 }
 0x15a   : > { %603 = vmatpush.bf16.msra.mxu1 %v542_v39  ;;  %1095 = vmatpush.bf16.msra.mxu3 %v542_v39 }
 0x15e   : > { %604 = vmatpush.bf16.msra.mxu1 %v541_v40  ;;  %1096 = vmatpush.bf16.msra.mxu3 %v541_v40 }
 0x161   : > { %605 = vmatmul.bf16.vlgmr.msra.gmra.mxu1 %v1026_v41  ;;  %625 = vmatmul.bf16.vlgmr.msra.gmra.mxu3 %v1030_v42 }
 0x171   : > { %610 = vmatmul.bf16.gmra.mxu1 %v1027_v43  ;;  %630 = vmatmul.bf16.gmra.mxu3 %v1031_v44 }
 0x181   : > { %615 = vmatmul.bf16.gmra.mxu1 %v1028_v45  ;;  %635 = vmatmul.bf16.gmra.mxu3 %v1032_v46 }
 0x191   : > { %620 = vmatmul.bf16.gmra.mxu1 %v1029_v47  ;;  %640 = vmatmul.bf16.gmra.mxu3 %v1033_v48 }
 0x1de   : > { %v606_v50 = vpop.f32.mrf.mxu1 }
 0x1df   : > { %v646_v51 = vadd.f32 %v606_v50, %v509_v49 }
 0x1e1   : > { %662 = vst [vmem:[#allocation2 + $0x30] sm:$0xff] %v646_v51 }
 0x1e4   : > { %v626_v53 = vpop.f32.mrf.mxu3 }
 0x1e5   : > { %v654_v55 = vadd.f32 %v626_v53, %v517_v52 }
 0x1e6   : > { %v608_v56 = vpop.f32.mrf.mxu1 }
 0x1e7   : > { %670 = vst [vmem:[#allocation2 + $0x40] sm:$0xff] %v654_v55  ;;  %v647_v57 = vadd.f32 %v608_v56, %v510_v54 }
 0x1e9   : > { %663 = vst [vmem:[#allocation2] sm:$0xff] %v647_v57 }
 0x1ec   : > { %v628_v59 = vpop.f32.mrf.mxu3 }
 0x1ed   : > { %v655_v61 = vadd.f32 %v628_v59, %v518_v58 }
 0x1ee   : > { %v611_v62 = vpop.f32.mrf.mxu1 }
 0x1ef   : > { %671 = vst [vmem:[#allocation2 + $0x20] sm:$0xff] %v655_v61  ;;  %v648_v63 = vadd.f32 %v611_v62, %v511_v60 }
 0x1f1   : > { %664 = vst [vmem:[#allocation2 + $0x58] sm:$0xff] %v648_v63 }
 0x1f4   : > { %v631_v1 = vpop.f32.mrf.mxu3 }
 0x1f5   : > { %v656_v3 = vadd.f32 %v631_v1, %v519_v0 }
 0x1f6   : > { %v613_v4 = vpop.f32.mrf.mxu1 }
 0x1f7   : > { %672 = vst [vmem:[#allocation2 + $0x10] sm:$0xff] %v656_v3  ;;  %v649_v5 = vadd.f32 %v613_v4, %v512_v2 }
 0x1f9   : > { %665 = vst [vmem:[#allocation2 + $0x18] sm:$0xff] %v649_v5 }
 0x1fc   : > { %v633_v7 = vpop.f32.mrf.mxu3 }
 0x1fd   : > { %v657_v9 = vadd.f32 %v633_v7, %v520_v6 }
 0x1fe   : > { %v616_v10 = vpop.f32.mrf.mxu1 }
 0x1ff   : > { %673 = vst [vmem:[#allocation2 + $0x38] sm:$0xff] %v657_v9  ;;  %v650_v11 = vadd.f32 %v616_v10, %v513_v8 }
 0x201   : > { %666 = vst [vmem:[#allocation2 + $0x50] sm:$0xff] %v650_v11 }
 0x204   : > { %v636_v13 = vpop.f32.mrf.mxu3 }
 0x205   : > { %v658_v15 = vadd.f32 %v636_v13, %v521_v12 }
 0x206   : > { %v618_v16 = vpop.f32.mrf.mxu1 }
 0x207   : > { %674 = vst [vmem:[#allocation2 + $0x60] sm:$0xff] %v658_v15  ;;  %v651_v17 = vadd.f32 %v618_v16, %v514_v14 }
 0x209   : > { %667 = vst [vmem:[#allocation2 + $0x68] sm:$0xff] %v651_v17 }
 0x20c   : > { %v638_v19 = vpop.f32.mrf.mxu3 }
 0x20d   : > { %v659_v21 = vadd.f32 %v638_v19, %v522_v18 }
 0x20e   : > { %v621_v22 = vpop.f32.mrf.mxu1 }
 0x20f   : > { %675 = vst [vmem:[#allocation2 + $0x70] sm:$0xff] %v659_v21  ;;  %v652_v23 = vadd.f32 %v621_v22, %v515_v20 }
 0x211   : > { %668 = vst [vmem:[#allocation2 + $0x8] sm:$0xff] %v652_v23 }
 0x214   : > { %v641_v25 = vpop.f32.mrf.mxu3 }
 0x215   : > { %v660_v27 = vadd.f32 %v641_v25, %v523_v24 }
 0x216   : > { %v623_v28 = vpop.f32.mrf.mxu1 }
 0x217   : > { %676 = vst [vmem:[#allocation2 + $0x78] sm:$0xff] %v660_v27  ;;  %v653_v29 = vadd.f32 %v623_v28, %v516_v26 }
 0x219   : > { %669 = vst [vmem:[#allocation2 + $0x48] sm:$0xff] %v653_v29 }
 0x21b   : > { %681 = sbr.rel (%p1006_p1) target bundleno = 560 (0x230), region = 60 }
 0x21c   : > { %v643_v31 = vpop.f32.mrf.mxu3 }
 0x21d   : > { %v661_v32 = vadd.f32 %v643_v31, %v524_v30 }
 0x21f   : > { %677 = vst [vmem:[#allocation2 + $0x28] sm:$0xff] %v661_v32 }
 0x220   : > { %v682_v33 = vld [vmem:[#allocation2 + $0x30] sm:$0xff]  ;;  %v683_v34 = vld [vmem:[#allocation2] sm:$0xff]  ;;  %v684_v36 = vld [vmem:[#allocation2 + $0x58] sm:$0xff] }
 0x221   : > { %v1223_v35 = vld [vmem:[#allocation8] ss:$0 sm:$0xff]  ;;  %v685_v37 = vld [vmem:[#allocation2 + $0x18] sm:$0xff]  ;;  %v686_v38 = vld [vmem:[#allocation2 + $0x50] sm:$0xff] }
 0x222   : > { %v687_v39 = vld [vmem:[#allocation2 + $0x68] sm:$0xff]  ;;  %v702_v41 = vadd.f32 %v1223_v35, %v682_v33  ;;  %v703_v42 = vadd.f32 %v1223_v35, %v683_v34  ;;  %v704_v43 = vadd.f32 %v1223_v35, %v684_v36  ;;  %v705_v44 = vadd.f32 %v1223_v35, %v685_v37  ;;  %v690_v50 = vld [vmem:[#allocation2 + $0x40] sm:$0xff]  ;;  %v692_v56 = vld [vmem:[#allocation2 + $0x10] sm:$0xff] }
 0x223   : > { %v688_v40 = vld [vmem:[#allocation2 + $0x8] sm:$0xff]  ;;  %v706_v46 = vadd.f32 %v1223_v35, %v686_v38  ;;  %v707_v47 = vadd.f32 %v1223_v35, %v687_v39  ;;  %v691_v51 = vld [vmem:[#allocation2 + $0x20] sm:$0xff]  ;;  %v693_v57 = vld [vmem:[#allocation2 + $0x38] sm:$0xff]  ;;  %v710_v2 = vadd.f32 %v1223_v35, %v690_v50  ;;  %v712_v8 = vadd.f32 %v1223_v35, %v692_v56 }
 0x224   : > { %v689_v45 = vld [vmem:[#allocation2 + $0x48] sm:$0xff]  ;;  %v708_v48 = vadd.f32 %v1223_v35, %v688_v40  ;;  %v718_v52 = vmax.f32 %v702_v41, 0.0  ;;  %v719_v53 = vmax.f32 %v703_v42, 0.0  ;;  %v720_v54 = vmax.f32 %v704_v43, 0.0  ;;  %v694_v62 = vld [vmem:[#allocation2 + $0x60] sm:$0xff]  ;;  %v695_v63 = vld [vmem:[#allocation2 + $0x70] sm:$0xff] }
 0x225   : > { %v709_v49 = vadd.f32 %v1223_v35, %v689_v45  ;;  %v721_v55 = vmax.f32 %v705_v44, 0.0  ;;  %v722_v58 = vmax.f32 %v706_v46, 0.0  ;;  %v723_v59 = vmax.f32 %v707_v47, 0.0  ;;  %v696_v4 = vld [vmem:[#allocation2 + $0x78] sm:$0xff] }
 0x226   : > { %v724_v60 = vmax.f32 %v708_v48, 0.0  ;;  %v1037_v0 = vpack.c.bf16 %v719_v53, %v718_v52  ;;  %v711_v3 = vadd.f32 %v1223_v35, %v691_v51  ;;  %v697_v5 = vld [vmem:[#allocation2 + $0x28] sm:$0xff]  ;;  %v713_v9 = vadd.f32 %v1223_v35, %v693_v57 }
 0x227   : > { %v725_v61 = vmax.f32 %v709_v49, 0.0  ;;  %v1042_v1 = vpack.c.bf16 %v721_v55, %v720_v54  ;;  %v1047_v6 = vpack.c.bf16 %v723_v59, %v722_v58  ;;  %v726_v10 = vmax.f32 %v710_v2, 0.0 }
 0x228   : > { %1038 = vst [vmem:[%s1662_s6] sm:$0xff] %v1037_v0   ;;  %v727_v11 = vmax.f32 %v711_v3, 0.0  ;;  %v714_v12 = vadd.f32 %v1223_v35, %v694_v62  ;;  %v715_v13 = vadd.f32 %v1223_v35, %v695_v63  ;;  %v728_v14 = vmax.f32 %v712_v8, 0.0 }
 0x229   : > { %v1052_v7 = vpack.c.bf16 %v725_v61, %v724_v60  ;;  %1074 = vst [vmem:[%s1662_s6 + $0x8] sm:$0xff] %v1042_v1   ;;  %v729_v15 = vmax.f32 %v713_v9, 0.0  ;;  %v716_v16 = vadd.f32 %v1223_v35, %v696_v4  ;;  %v717_v17 = vadd.f32 %v1223_v35, %v697_v5 }
 0x22a   : > { %1075 = vst [vmem:[%s1662_s6 + $0x10] sm:$0xff] %v1047_v6   ;;  %v1057_v18 = vpack.c.bf16 %v727_v11, %v726_v10  ;;  %v730_v19 = vmax.f32 %v714_v12, 0.0  ;;  %v731_v20 = vmax.f32 %v715_v13, 0.0 }
 0x22b   : > { %1076 = vst [vmem:[%s1662_s6 + $0x18] sm:$0xff] %v1052_v7   ;;  %v1062_v21 = vpack.c.bf16 %v729_v15, %v728_v14  ;;  %v732_v22 = vmax.f32 %v716_v16, 0.0  ;;  %v733_v23 = vmax.f32 %v717_v17, 0.0 }
 0x22c   : > { %1077 = vst [vmem:[%s1662_s6 + $0x20] sm:$0xff] %v1057_v18   ;;  %v1067_v24 = vpack.c.bf16 %v731_v20, %v730_v19 }
 0x22d   : > { %1078 = vst [vmem:[%s1662_s6 + $0x28] sm:$0xff] %v1062_v21   ;;  %v1072_v25 = vpack.c.bf16 %v733_v23, %v732_v22 }
 0x22e   : > { %1079 = vst [vmem:[%s1662_s6 + $0x30] sm:$0xff] %v1067_v24  }
 0x22f   : > { %1080 = vst [vmem:[%s1662_s6 + $0x38] sm:$0xff] %v1072_v25  }
 0x230 PF: > { %s21_s25 = sadd.s32 1, %s1446_s25   ;;  %s1759_s27 = sld [smem:[#allocation18_spill]] }
 0x231   : > { %p18_p7 = scmp.ge.s32.totalorder %s21_s25, 11   ;;  %s1760_s22 = sld [smem:[#allocation15_spill]] }
 0x232   : > { %s1761_s12 = sld [smem:[#allocation16_spill]]  ;;  %s1763_s15 = smov %s1410_s16 }
 0x233   : > { %s1762_s24 = sld [smem:[#allocation17_spill]]  ;;  %s1764_s16 = smov %s1414_s17 }
 0x234   : > { %s1765_s17 = smov %s1618_s14  ;;  %s1766_s18 = smov %s1422_s19 }
 0x235   : > { %s1767_s19 = smov %s1426_s20  ;;  %s1769_s21 = smov %s1438_s23 }
 0x236   : > { %s1768_s20 = smov %s1759_s27  ;;  %20 = sbr.rel (!%p18_p7) target bundleno = 15 (0xf), region = 105 }
 0x238   : > { %s1770_s23 = smov %s1761_s12 }
 0x23b   :  { %788 = vsyncpa [#allocation4], 1 }
 0x23c   :  { %790 = vsyncpa [#allocation4 + $0x1], 1 }
 0x23d   :  { %791 = vsyncpa [#allocation6], 1 }
 0x23e   :  { %793 = vsyncpa [#allocation6 + $0x1], 1 }
 0x23f   :  { %794 = vsyncpa [#allocation9], 1 }

</bundles_post_ra>
